<compile_context>
chip_gen: v5e
topology: v5e:2x2
jax: 0.10.0
libtpu: 0.0.40
codegen_flags: <defaults>
</compile_context>

<pallas_src>
import functools

import jax
import jax.numpy as jnp
from jax.experimental import pallas as pl
from jax.experimental.pallas import tpu as pltpu


def _round_up(n, m):
    return ((n + m - 1) // m) * m


# --------------------------------- kernel -----------------------------------

def wavenet_block_kernel(
    x_cur_ref,            # (1, T_tile, C_in)   current time tile
    x_prev_ref,           # (1, T_tile, C_in)   previous time tile (halo source)
    w_in_ref,             # (C_in, Cp)          1x1 input projection
    w_fg_ref,             # (K*Cp, 2*Cp)        stacked filter|gate taps, BN scale folded
    w_out_ref,            # (Cp, Cp+Csp)        fused residual|skip 1x1 projection
    vec_ref,              # (8, W)              packed per-channel vectors
    out_ref,              # (1, T_tile, Cp+Csp) combined residual|skip output
    *, kernel_size, dilation, t_tile, cp, csp, compute_dtype):
    halo = (kernel_size - 1) * dilation

    vecs = vec_ref[...]                      # tiny (8, W) f32 tile
    b_in = vecs[0:1, :cp]                    # input-projection bias
    shift_fg = vecs[1:2, :2 * cp]            # conv bias + BN shift  (filter | gate)
    b_out = vecs[2:3, :cp + csp]             # residual | skip biases

    w_in = w_in_ref[...].astype(compute_dtype)

    # 1x1 input projection of the current tile (f32 accumulation).
    x_cur = x_cur_ref[0].astype(compute_dtype)                           # (T, C_in)
    xp_cur = jnp.dot(x_cur, w_in, preferred_element_type=jnp.float32) + b_in

    # Causal halo: last `halo` rows of the previous tile, projected.  The first
    # time tile gets zeros (== causal_padding of the projected signal).
    if halo > 0:
        x_prev = x_prev_ref[0].astype(compute_dtype)                     # (T, C_in)
        x_tail = jax.lax.slice_in_dim(x_prev, t_tile - halo, t_tile, axis=0)
        xp_tail = jnp.dot(x_tail, w_in, preferred_element_type=jnp.float32) + b_in
        not_first = jnp.where(pl.program_id(1) > 0, 1.0, 0.0)
        xp_ext = jnp.concatenate([xp_tail * not_first, xp_cur], axis=0)  # (halo+T, Cp)
    else:
        xp_ext = xp_cur

    # Stack the K causally-shifted taps along the contraction axis so that a
    # single MXU matmul produces filter AND gate pre-activations.
    taps = []
    for k in range(kernel_size):
        off = halo - (kernel_size - 1 - k) * dilation                    # static
        taps.append(jax.lax.slice_in_dim(xp_ext, off, off + t_tile, axis=0))
    x_stack = taps[0] if kernel_size == 1 else jnp.concatenate(taps, axis=-1)

    fg = jnp.dot(x_stack.astype(compute_dtype),
                 w_fg_ref[...].astype(compute_dtype),
                 preferred_element_type=jnp.float32) + shift_fg          # (T, 2*Cp)

    gated = jnp.tanh(fg[:, :cp]) * jax.nn.sigmoid(fg[:, cp:])            # (T, Cp)
    # TODO(synk): Dropout is identity (eval); BatchNorm uses folded running stats.

    rs = jnp.dot(gated.astype(compute_dtype),
                 w_out_ref[...].astype(compute_dtype),
                 preferred_element_type=jnp.float32) + b_out             # (T, Cp+Csp)

    # Residual adds the projected input; single lane-dense store of the
    # combined [residual | skip] block.
    out = jnp.concatenate([rs[:, :cp] + xp_cur, rs[:, cp:]], axis=-1)
    out_ref[0] = out.astype(out_ref.dtype)


# -------------------------------- wrappers -----------------------------------

def wavenet_block_pallas_ntc(x_ntc, params, *, kernel_size, dilation,
                             t_tile=None, compute_dtype=jnp.float32):
    """x_ntc: (B, T, C_in) -> (residual (B, T, C_res), skip (B, T, C_skip))."""
    B, T, C_in = x_ntc.shape
    cp, csp = params["cp"], params["csp"]
    c_res, c_skip = params["c_res"], params["c_skip"]
    halo = (kernel_size - 1) * dilation

    if t_tile is None:
        t_tile = T
        for cand in (2048, 1024, 512):        # VMEM-friendly tiles (v7x: 64 MiB/TC)
            if T > cand and T % cand == 0 and cand >= halo:
                t_tile = cand
                break
    assert T % t_tile == 0, "t_tile must divide T"
    assert t_tile == T or t_tile % 8 == 0, "t_tile must be a multiple of 8"
    assert halo <= t_tile, "time tile must cover the causal halo (K-1)*dilation"
    nt = T // t_tile

    kern = functools.partial(
        wavenet_block_kernel, kernel_size=kernel_size, dilation=dilation,
        t_tile=t_tile, cp=cp, csp=csp, compute_dtype=compute_dtype)

    w_in, w_fg, w_out, vecs = (params["w_in"], params["w_fg"],
                               params["w_out"], params["vecs"])

    itemsize = 4
    flops = 2 * B * T * (C_in * cp + (kernel_size * cp) * (2 * cp) + cp * (cp + csp))
    bytes_accessed = itemsize * (2 * B * T * C_in + B * T * (cp + csp)
                                 + B * nt * (w_in.size + w_fg.size + w_out.size + vecs.size))
    cost = pl.CostEstimate(flops=int(flops),
                           transcendentals=int(2 * B * T * cp),
                           bytes_accessed=int(bytes_accessed))

    out = pl.pallas_call(
        kern,
        out_shape=jax.ShapeDtypeStruct((B, T, cp + csp), jnp.float32),
        grid=(B, nt),
        in_specs=[
            # current time tile
            pl.BlockSpec((1, t_tile, C_in), lambda b, j: (b, j, 0)),
            # previous time tile (causal halo); at j==0 the kernel zero-masks it
            pl.BlockSpec((1, t_tile, C_in), lambda b, j: (b, jnp.maximum(j - 1, 0), 0)),
            pl.BlockSpec(w_in.shape, lambda b, j: (0, 0)),
            pl.BlockSpec(w_fg.shape, lambda b, j: (0, 0)),
            pl.BlockSpec(w_out.shape, lambda b, j: (0, 0)),
            pl.BlockSpec(vecs.shape, lambda b, j: (0, 0)),
        ],
        out_specs=pl.BlockSpec((1, t_tile, cp + csp), lambda b, j: (b, j, 0)),
        compiler_params=pltpu.CompilerParams(
            dimension_semantics=("parallel", "parallel")),
        cost_estimate=cost,
    )(x_ntc, x_ntc, w_in, w_fg, w_out, vecs)

    return out[:, :, :c_res], out[:, :, cp:cp + c_skip]


def wavenet_block_pallas_nct(x_nct, params, **kw):
    """PyTorch-layout wrapper (B, C, T).  Stacked blocks should stay in NTC and
    call wavenet_block_pallas_ntc directly to avoid per-block transposes."""
    x_ntc = jnp.transpose(x_nct, (0, 2, 1))
    res, skip = wavenet_block_pallas_ntc(x_ntc, params, **kw)
    return jnp.transpose(res, (0, 2, 1)), jnp.transpose(skip, (0, 2, 1))


# ----------------------------- pure-JAX reference -----------------------------

def reference_forward(x_nct, raw, *, dilation):
    eps = 1e-5

    def conv(x, w, b, dil, pad_left):
        y = jax.lax.conv_general_dilated(
            x, w, window_strides=(1,), padding=[(pad_left, 0)],
            rhs_dilation=(dil,), dimension_numbers=("NCH", "OIH", "NCH"))
        return y + b[None, :, None]

    def bn(y, gamma, beta, mean, var):
        return ((y - mean[None, :, None]) / jnp.sqrt(var[None, :, None] + eps)
                * gamma[None, :, None] + beta[None, :, None])

    x = conv(x_nct, raw["in_w"], raw["in_b"], 1, 0)
    x_orig = x
    pad = (raw["f_w"].shape[-1] - 1) * dilation
    f = conv(x, raw["f_w"], raw["f_b"], dilation, pad)
    g = conv(x, raw["g_w"], raw["g_b"], dilation, pad)
    f = bn(f, raw["f_gamma"], raw["f_beta"], raw["f_mean"], raw["f_var"])
    g = bn(g, raw["g_gamma"], raw["g_beta"], raw["g_mean"], raw["g_var"])
    gated = jnp.tanh(f) * jax.nn.sigmoid(g)
    res = conv(gated, raw["res_w"], raw["res_b"], 1, 0) + x_orig
    skip = conv(gated, raw["skip_w"], raw["skip_b"], 1, 0)
    return res, skip


# ----------------------------- param setup ------------------------------------

def make_params(key, *, input_channels, residual_channels, skip_channels,
                kernel_size):
    eps = 1e-5
    ks = jax.random.split(key, 20)
    nrm = lambda k, shape, s=0.2: s * jax.random.normal(k, shape, jnp.float32)

    raw = {
        # PyTorch Conv1d weight layout: (C_out, C_in, K)
        "in_w": nrm(ks[0], (residual_channels, input_channels, 1)),
        "in_b": nrm(ks[1], (residual_channels,)),
        "f_w": nrm(ks[2], (residual_channels, residual_channels, kernel_size)),
        "f_b": nrm(ks[3], (residual_channels,)),
        "g_w": nrm(ks[4], (residual_channels, residual_channels, kernel_size)),
        "g_b": nrm(ks[5], (residual_channels,)),
        "f_gamma": 1.0 + nrm(ks[6], (residual_channels,)),
        "f_beta": nrm(ks[7], (residual_channels,)),
        "f_mean": nrm(ks[8], (residual_channels,)),
        "f_var": jax.random.uniform(ks[9], (residual_channels,), jnp.float32, 0.5, 1.5),
        "g_gamma": 1.0 + nrm(ks[10], (residual_channels,)),
        "g_beta": nrm(ks[11], (residual_channels,)),
        "g_mean": nrm(ks[12], (residual_channels,)),
        "g_var": jax.random.uniform(ks[13], (residual_channels,), jnp.float32, 0.5, 1.5),
        "res_w": nrm(ks[14], (residual_channels, residual_channels, 1)),
        "res_b": nrm(ks[15], (residual_channels,)),
        "skip_w": nrm(ks[16], (skip_channels, residual_channels, 1)),
        "skip_b": nrm(ks[17], (skip_channels,)),
    }

    cp = _round_up(residual_channels, 128)     # lane-padded residual width
    csp = _round_up(skip_channels, 128)        # lane-padded skip width
    vw = max(2 * cp, cp + csp)

    f_scale = raw["f_gamma"] / jnp.sqrt(raw["f_var"] + eps)
    g_scale = raw["g_gamma"] / jnp.sqrt(raw["g_var"] + eps)
    # Fold conv bias + BN mean/beta into a single additive shift; BN scale is
    # folded into the conv weights below.
    f_shift = raw["f_beta"] + (raw["f_b"] - raw["f_mean"]) * f_scale
    g_shift = raw["g_beta"] + (raw["g_b"] - raw["g_mean"]) * g_scale

    def pad2(a, r, c):
        return jnp.pad(a, ((0, r - a.shape[0]), (0, c - a.shape[1])))

    def pad1(v, n):
        return jnp.pad(v, (0, n - v.shape[0]))

    # Stacked (K*cp, 2*cp) filter|gate weight: rows k*cp:(k+1)*cp hold tap k.
    blocks = []
    for k in range(kernel_size):
        wf_k = pad2(raw["f_w"][:, :, k].T * f_scale[None, :], cp, cp)
        wg_k = pad2(raw["g_w"][:, :, k].T * g_scale[None, :], cp, cp)
        blocks.append(jnp.concatenate([wf_k, wg_k], axis=1))
    w_fg = jnp.concatenate(blocks, axis=0)

    # Fused residual|skip 1x1 projection: (cp, cp+csp).
    w_out = jnp.concatenate(
        [pad2(raw["res_w"][:, :, 0].T, cp, cp),
         pad2(raw["skip_w"][:, :, 0].T, cp, csp)], axis=1)

    # Pack the small per-channel vectors into one (8, vw) tile.
    vecs = jnp.zeros((8, vw), jnp.float32)
    vecs = vecs.at[0].set(pad1(raw["in_b"], vw))
    vecs = vecs.at[1].set(pad1(jnp.concatenate([pad1(f_shift, cp), pad1(g_shift, cp)]), vw))
    vecs = vecs.at[2].set(pad1(jnp.concatenate([pad1(raw["res_b"], cp),
                                                pad1(raw["skip_b"], csp)]), vw))

    params = {
        "w_in": pad2(raw["in_w"][:, :, 0].T, input_channels, cp),
        "w_fg": w_fg,
        "w_out": w_out,
        "vecs": vecs,
        "cp": cp, "csp": csp,
        "c_res": residual_channels, "c_skip": skip_channels,
    }
    return raw, params


if __name__ == "__main__":
    B, C_IN, C_RES, C_SKIP, T = 2, 8, 16, 8, 32
    KERNEL_SIZE, DILATION = 3, 2
    T_TILE = 16                       # 2 time tiles -> exercises the causal-halo path

    key = jax.random.PRNGKey(0)
    kx, kp = jax.random.split(key)
    x = jax.random.normal(kx, (B, C_IN, T), jnp.float32)     # PyTorch NCT layout

    raw, params = make_params(kp, input_channels=C_IN, residual_channels=C_RES,
                              skip_channels=C_SKIP, kernel_size=KERNEL_SIZE)

    # f32 MXU path — matches the reference tightly.
    res, skip = wavenet_block_pallas_nct(
        x, params, kernel_size=KERNEL_SIZE, dilation=DILATION,
        t_tile=T_TILE, compute_dtype=jnp.float32)
    jax.block_until_ready((res, skip))

    res_ref, skip_ref = reference_forward(x, raw, dilation=DILATION)
    assert jnp.allclose(res, res_ref, atol=1e-4, rtol=1e-4), "residual mismatch (f32)"
    assert jnp.allclose(skip, skip_ref, atol=1e-4, rtol=1e-4), "skip mismatch (f32)"

    # bf16 MXU-operand path (v6e/v7x fast path); elementwise math stays f32.
    res_bf, skip_bf = wavenet_block_pallas_nct(
        x, params, kernel_size=KERNEL_SIZE, dilation=DILATION,
        t_tile=T_TILE, compute_dtype=jnp.bfloat16)
    jax.block_until_ready((res_bf, skip_bf))
    assert jnp.allclose(res_bf, res_ref, atol=1e-1, rtol=1e-1), "residual mismatch (bf16)"
    assert jnp.allclose(skip_bf, skip_ref, atol=1e-1, rtol=1e-1), "skip mismatch (bf16)"

    print("KERNEL_OK")
</pallas_src>

<mosaic_0001>
module attributes {stable_mosaic.version = 11 : i64} {
  func.func @wavenet_block_kernel(%arg0: i32, %arg1: i32, %arg2: memref<1x16x8xf32, #tpu.memory_space<vmem>>, %arg3: memref<1x16x8xf32, #tpu.memory_space<vmem>>, %arg4: memref<8x128xf32, #tpu.memory_space<vmem>>, %arg5: memref<384x256xf32, #tpu.memory_space<vmem>>, %arg6: memref<128x256xf32, #tpu.memory_space<vmem>>, %arg7: memref<8x256xf32, #tpu.memory_space<vmem>>, %arg8: memref<1x16x256xf32, #tpu.memory_space<vmem>>) attributes {dimension_semantics = [#tpu.dimension_semantics<parallel>, #tpu.dimension_semantics<parallel>], iteration_bounds = array<i64: 2, 2>, scalar_prefetch = 0 : i64, scratch_operands = 0 : i64, tpu.core_type = #tpu.core_type<tc>, window_params = [{transform_indices = @transform_0, window_bounds = array<i64: 1, 16, 8>}, {transform_indices = @transform_1, window_bounds = array<i64: 1, 16, 8>}, {pipeline_mode = #tpu.pipeline_mode<synchronous>, transform_indices = @transform_2, window_bounds = array<i64: 8, 128>}, {pipeline_mode = #tpu.pipeline_mode<synchronous>, transform_indices = @transform_3, window_bounds = array<i64: 384, 256>}, {pipeline_mode = #tpu.pipeline_mode<synchronous>, transform_indices = @transform_4, window_bounds = array<i64: 128, 256>}, {pipeline_mode = #tpu.pipeline_mode<synchronous>, transform_indices = @transform_5, window_bounds = array<i64: 8, 256>}, {transform_indices = @transform_6, window_bounds = array<i64: 1, 16, 256>}]} {
    %c0 = arith.constant 0 : index
    %c0_0 = arith.constant 0 : index
    %0 = vector.load %arg7[%c0, %c0_0] : memref<8x256xf32, #tpu.memory_space<vmem>>, vector<8x256xf32>
    %1 = vector.extract_strided_slice %0 {offsets = [0, 0], sizes = [1, 128], strides = [1, 1]} : vector<8x256xf32> to vector<1x128xf32>
    %2 = vector.extract_strided_slice %0 {offsets = [1, 0], sizes = [1, 256], strides = [1, 1]} : vector<8x256xf32> to vector<1x256xf32>
    %3 = vector.extract_strided_slice %0 {offsets = [2, 0], sizes = [1, 256], strides = [1, 1]} : vector<8x256xf32> to vector<1x256xf32>
    %c0_1 = arith.constant 0 : index
    %c0_2 = arith.constant 0 : index
    %4 = vector.load %arg4[%c0_1, %c0_2] : memref<8x128xf32, #tpu.memory_space<vmem>>, vector<8x128xf32>
    %c0_3 = arith.constant 0 : index
    %c0_4 = arith.constant 0 : index
    %c0_5 = arith.constant 0 : index
    %5 = vector.load %arg2[%c0_3, %c0_4, %c0_5] : memref<1x16x8xf32, #tpu.memory_space<vmem>>, vector<1x16x8xf32>
    %6 = vector.shape_cast %5 : vector<1x16x8xf32> to vector<16x8xf32>
    %cst = arith.constant dense<0.000000e+00> : vector<16x128xf32>
    %7 = tpu.matmul %6, %4, %cst {dimension_numbers = #tpu.dot_dimension_numbers<[1], [0], [0], [1], [0, 0, 1, 1], [], []>} : vector<16x8xf32>, vector<8x128xf32>, vector<16x128xf32> -> vector<16x128xf32>
    %8 = vector.broadcast %1 : vector<1x128xf32> to vector<16x128xf32>
    %9 = arith.addf %7, %8 : vector<16x128xf32>
    %c0_6 = arith.constant 0 : index
    %c0_7 = arith.constant 0 : index
    %c0_8 = arith.constant 0 : index
    %10 = vector.load %arg3[%c0_6, %c0_7, %c0_8] : memref<1x16x8xf32, #tpu.memory_space<vmem>>, vector<1x16x8xf32>
    %11 = vector.shape_cast %10 : vector<1x16x8xf32> to vector<16x8xf32>
    %12 = vector.extract_strided_slice %11 {offsets = [12, 0], sizes = [4, 8], strides = [1, 1]} : vector<16x8xf32> to vector<4x8xf32>
    %cst_9 = arith.constant dense<0.000000e+00> : vector<4x128xf32>
    %13 = tpu.matmul %12, %4, %cst_9 {dimension_numbers = #tpu.dot_dimension_numbers<[1], [0], [0], [1], [0, 0, 1, 1], [], []>} : vector<4x8xf32>, vector<8x128xf32>, vector<4x128xf32> -> vector<4x128xf32>
    %14 = vector.broadcast %1 : vector<1x128xf32> to vector<4x128xf32>
    %15 = arith.addf %13, %14 : vector<4x128xf32>
    %c0_i32 = arith.constant 0 : i32
    %16 = arith.cmpi sgt, %arg1, %c0_i32 : i32
    %cst_10 = arith.constant 1.000000e+00 : f32
    %cst_11 = arith.constant 0.000000e+00 : f32
    %17 = arith.select %16, %cst_10, %cst_11 : f32
    %18 = vector.broadcast %17 : f32 to vector<4x128xf32>
    %19 = arith.mulf %15, %18 : vector<4x128xf32>
    %20 = tpu.concatenate %19, %9 in 0 : vector<4x128xf32>, vector<16x128xf32> -> vector<20x128xf32>
    %21 = vector.extract_strided_slice %20 {offsets = [0, 0], sizes = [16, 128], strides = [1, 1]} : vector<20x128xf32> to vector<16x128xf32>
    %22 = vector.extract_strided_slice %20 {offsets = [2, 0], sizes = [16, 128], strides = [1, 1]} : vector<20x128xf32> to vector<16x128xf32>
    %23 = vector.extract_strided_slice %20 {offsets = [4, 0], sizes = [16, 128], strides = [1, 1]} : vector<20x128xf32> to vector<16x128xf32>
    %24 = tpu.concatenate %21, %22, %23 in 1 : vector<16x128xf32>, vector<16x128xf32>, vector<16x128xf32> -> vector<16x384xf32>
    %c0_12 = arith.constant 0 : index
    %c0_13 = arith.constant 0 : index
    %25 = vector.load %arg5[%c0_12, %c0_13] : memref<384x256xf32, #tpu.memory_space<vmem>>, vector<384x256xf32>
    %cst_14 = arith.constant dense<0.000000e+00> : vector<16x256xf32>
    %26 = tpu.matmul %24, %25, %cst_14 {dimension_numbers = #tpu.dot_dimension_numbers<[1], [0], [0], [1], [0, 0, 1, 1], [], []>} : vector<16x384xf32>, vector<384x256xf32>, vector<16x256xf32> -> vector<16x256xf32>
    %27 = vector.broadcast %2 : vector<1x256xf32> to vector<16x256xf32>
    %28 = arith.addf %26, %27 : vector<16x256xf32>
    %29 = vector.extract_strided_slice %28 {offsets = [0, 0], sizes = [16, 128], strides = [1, 1]} : vector<16x256xf32> to vector<16x128xf32>
    %30 = math.tanh %29 : vector<16x128xf32>
    %31 = vector.extract_strided_slice %28 {offsets = [0, 128], sizes = [16, 128], strides = [1, 1]} : vector<16x256xf32> to vector<16x128xf32>
    %32 = arith.negf %31 : vector<16x128xf32>
    %33 = math.exp %32 : vector<16x128xf32>
    %cst_15 = arith.constant 1.000000e+00 : f32
    %34 = vector.broadcast %cst_15 : f32 to vector<16x128xf32>
    %35 = arith.addf %34, %33 : vector<16x128xf32>
    %36 = arith.divf %34, %35 : vector<16x128xf32>
    %37 = arith.mulf %30, %36 : vector<16x128xf32>
    %c0_16 = arith.constant 0 : index
    %c0_17 = arith.constant 0 : index
    %38 = vector.load %arg6[%c0_16, %c0_17] : memref<128x256xf32, #tpu.memory_space<vmem>>, vector<128x256xf32>
    %cst_18 = arith.constant dense<0.000000e+00> : vector<16x256xf32>
    %39 = tpu.matmul %37, %38, %cst_18 {dimension_numbers = #tpu.dot_dimension_numbers<[1], [0], [0], [1], [0, 0, 1, 1], [], []>} : vector<16x128xf32>, vector<128x256xf32>, vector<16x256xf32> -> vector<16x256xf32>
    %40 = vector.broadcast %3 : vector<1x256xf32> to vector<16x256xf32>
    %41 = arith.addf %39, %40 : vector<16x256xf32>
    %42 = vector.extract_strided_slice %41 {offsets = [0, 0], sizes = [16, 128], strides = [1, 1]} : vector<16x256xf32> to vector<16x128xf32>
    %43 = arith.addf %42, %9 : vector<16x128xf32>
    %44 = vector.extract_strided_slice %41 {offsets = [0, 128], sizes = [16, 128], strides = [1, 1]} : vector<16x256xf32> to vector<16x128xf32>
    %45 = tpu.concatenate %43, %44 in 1 : vector<16x128xf32>, vector<16x128xf32> -> vector<16x256xf32>
    %c0_19 = arith.constant 0 : index
    %c0_20 = arith.constant 0 : index
    %c0_21 = arith.constant 0 : index
    %46 = vector.load %arg8[%c0_19, %c0_20, %c0_21] : memref<1x16x256xf32, #tpu.memory_space<vmem>>, vector<1x16x256xf32>
    %47 = vector.shape_cast %46 : vector<1x16x256xf32> to vector<16x256xf32>
    %48 = vector.shape_cast %45 : vector<16x256xf32> to vector<1x16x256xf32>
    tpu.vector_store %arg8[%c0_19, %c0_20, %c0_21], %48 {strides = array<i32>} : memref<1x16x256xf32, #tpu.memory_space<vmem>>, vector<1x16x256xf32>,
    return
  }
  func.func @transform_0(%arg0: i32, %arg1: i32) -> (i32, i32, i32) {
    %c0_i32 = arith.constant 0 : i32
    %c0_i32_0 = arith.constant 0 : i32
    return %arg0, %arg1, %c0_i32 : i32, i32, i32
  }
  func.func @transform_1(%arg0: i32, %arg1: i32) -> (i32, i32, i32) {
    %c1_i32 = arith.constant 1 : i32
    %0 = arith.subi %arg1, %c1_i32 : i32
    %c0_i32 = arith.constant 0 : i32
    %1 = arith.maxsi %0, %c0_i32 : i32
    %c0_i32_0 = arith.constant 0 : i32
    %c0_i32_1 = arith.constant 0 : i32
    return %arg0, %1, %c0_i32_0 : i32, i32, i32
  }
  func.func @transform_2(%arg0: i32, %arg1: i32) -> (i32, i32) {
    %c0_i32 = arith.constant 0 : i32
    %c0_i32_0 = arith.constant 0 : i32
    %c0_i32_1 = arith.constant 0 : i32
    return %c0_i32, %c0_i32_0 : i32, i32
  }
  func.func @transform_3(%arg0: i32, %arg1: i32) -> (i32, i32) {
    %c0_i32 = arith.constant 0 : i32
    %c0_i32_0 = arith.constant 0 : i32
    %c0_i32_1 = arith.constant 0 : i32
    return %c0_i32, %c0_i32_0 : i32, i32
  }
  func.func @transform_4(%arg0: i32, %arg1: i32) -> (i32, i32) {
    %c0_i32 = arith.constant 0 : i32
    %c0_i32_0 = arith.constant 0 : i32
    %c0_i32_1 = arith.constant 0 : i32
    return %c0_i32, %c0_i32_0 : i32, i32
  }
  func.func @transform_5(%arg0: i32, %arg1: i32) -> (i32, i32) {
    %c0_i32 = arith.constant 0 : i32
    %c0_i32_0 = arith.constant 0 : i32
    %c0_i32_1 = arith.constant 0 : i32
    return %c0_i32, %c0_i32_0 : i32, i32
  }
  func.func @transform_6(%arg0: i32, %arg1: i32) -> (i32, i32, i32) {
    %c0_i32 = arith.constant 0 : i32
    %c0_i32_0 = arith.constant 0 : i32
    return %arg0, %arg1, %c0_i32 : i32, i32, i32
  }
}

</mosaic_0001>

<bundles_post_ra>
// kernel: tpu_custom_call.1
= control target key start
LH: loop header
LB: loop body
LE: loop exit
PB: predicated region body
PF: predicated region fallthrough
CT: control target
= control target key end

     0   :  { %11 = vsyncpa [#allocation3], 0  ;;  %s1509_s0 = inlined_call_operand.vmem [shape: f32[2,32,8], index: 0, kind: input, shape index: {}]   ;;  %s1510_s1 = inlined_call_operand.vmem [shape: f32[2,32,8], index: 1, kind: input, shape index: {}]   ;;  %s1511_s2 = inlined_call_operand.vmem [shape: f32[8,128], index: 2, kind: input, shape index: {}]   ;;  %s1512_s3 = inlined_call_operand.hbm [shape: f32[384,256], index: 3, kind: input, shape index: {}]   ;;  %s1513_s4 = inlined_call_operand.hbm [shape: f32[128,256], index: 4, kind: input, shape index: {}]   ;;  %s1514_s5 = inlined_call_operand.vmem [shape: f32[8,256], index: 5, kind: input, shape index: {}]   ;;  %s1515_s6 = inlined_call_operand.hbm [shape: f32[2,32,256], index: 6, kind: output, shape index: {}]  }
   0x1   :  { %12 = vsyncpa [#allocation6], 0 }
   0x2   :  { %13 = vsyncpa [#allocation4], 0 }
   0x3   :  { %15 = vsyncpa [#allocation4 + $0x1], 0  ;;  %s1312_s21 = smov 0   ;;  %s1314_s22 = smov 0  }
   0x4   :  { %s1316_s23 = smov 0   ;;  %s1318_s24 = smov 0  }
   0x5   :  { %s1320_s25 = smov 0   ;;  %s1322_s26 = smov 0  }
   0x6   :  { %s1324_s27 = smov 0   ;;  %s1326_s28 = smov 0  }
   0x7 LB: > { %1520 = sst [smem:[#allocation11_spill]] %s1261_s26  ;;  %s967_s29 = sadd.s32 4294967295, %s1269_s28   ;;  %s1269_s28 = sphi %s1326_s28, %s21_s28   ;;  %s1265_s27 = sphi %s1324_s27, %s1531_s27   ;;  %s1261_s26 = sphi %s1322_s26, %s1530_s26   ;;  %s1257_s25 = sphi %s1320_s25, %s1529_s25   ;;  %s1253_s24 = sphi %s1318_s24, %s1528_s24   ;;  %s1249_s23 = sphi %s1316_s23, %s1534_s23   ;;  %s1245_s22 = sphi %s1314_s22, %s1533_s22   ;;  %s1241_s21 = sphi %s1312_s21, %s1532_s21  }
   0x8   : > { %1521 = sst [smem:[#allocation12_spill]] %s1265_s27  ;;  %s968_s30 = sadd.s32 4294967294, %s1269_s28  }
   0x9   : > { %s30_s7 = sadd.s32 1, %s1261_s26  ;;  %s33_s8 = sadd.s32 1, %s1265_s27 }
   0xa   : > { %p31_p0 = scmp.ge.s32.totalorder %s30_s7, 2  ;;  %s188_s9 = sadd.s32 1, %s1249_s23 }
   0xb   : > { %p198_p1 = scmp.ne.s32.totalorder %s1249_s23, %s1245_s22  ;;  %p199_p2 = scmp.eq.s32.totalorder %s967_s29, 3 }
   0xc   : > { %s1536_s7 = smov (%p31_p0, %s30_s7), 0  ;;  %s1538_s8 = smov (!%p31_p0, %s33_s8), %s1265_s27 }
   0xd   : > { %1522 = sst [smem:[#allocation13_spill]] %s1536_s7  ;;  %s184_s10 = ssub.s32 %s1261_s26, %s1536_s7 }
   0xe   : > { %p1364_p3 = por %p199_p2, %p198_p1  ;;  %p35_p4 = scmp.ge.s32.totalorder %s1538_s8, 2 }
   0xf   : > { %p204_p5 = scmp.ne.s32.totalorder %s1245_s22, %s1241_s21  ;;  %p205_p6 = scmp.eq.s32.totalorder %s968_s30, 3 }
  0x10   : > { %p971_p7 = scmp.ge.s32.totalorder %s1269_s28, 1  ;;  %s1540_s8 = smov (%p35_p4, %s1538_s8), 0 }
  0x11   : > { %1524 = sst [smem:[#allocation14_spill]] %s1540_s8  ;;  %p1373_p8 = por %p205_p6, %p204_p5 }
  0x12   : > { %p212_p9 = scmp.lt.s32.totalorder %s1269_s28, 5  ;;  %s183_s13 = ssub.s32 %s1265_s27, %s1540_s8 }
  0x13   : > { %s185_s14 = sor.u32 %s184_s10, %s183_s13  ;;  %p1384_p12 = scmp.eq.s32.totalorder %s967_s29, 0 }
  0x14   : > { %p1380_p10 = pnand %p971_p7, %p212_p9  ;;  %p186_p11 = scmp.eq.s32.totalorder %s185_s14, 0 }
  0x15   : > { %s226_s19 = sshll.u32 %s1512_s3, 4  ;;  %s1271_s30 = smov [#allocation2]   ;;  %s227_s19 = int_to_ptr.hbm [resolvable:$true] %s226_s19 }
  0x16   : > { %p1009_p13 = pneg %p1380_p10  ;;  %s228_s10 = sshll.u32 %s1271_s30, 4  ;;  %s229_s10 = int_to_ptr.vmem [resolvable:$true] %s228_s10 }
  0x17   : > { %s1394_s20 = scalar_select %p186_p11, %s1249_s23, %s188_s9  }
  0x18   : > { %p1010_p0 = pnand %p1384_p12, %p1009_p13  ;;  %s1272_s13 = smov 256  }
  0x19   : > { %s1273_s29 = smov 16   ;;  %s240_s7 = sshll.u32 %s1513_s4, 4  ;;  %s241_s7 = int_to_ptr.hbm [resolvable:$true] %s240_s7 }
  0x1a   : > { %1012 = dma.hbm_to_vmem [thread:$0]  (!%p1010_p0), %s227_s19, 12288, %s229_s10, [#allocation3], %s1272_s13, %s1272_s13, %s1273_s29  }
  0x1b   : > { %s1274_s27 = smov [#allocation5]   ;;  %293 = sbr.rel (%p1380_p10) target bundleno = 508 (0x1fc), region = 44 }
  0x1c   : > { %s242_s26 = sshll.u32 %s1274_s27, 4  ;;  %s243_s26 = int_to_ptr.vmem [resolvable:$true] %s242_s26 }
  0x1d   : > { %1015 = dma.hbm_to_vmem [thread:$0]  (!%p1010_p0), %s241_s7, 4096, %s243_s26, [#allocation6], %s1272_s13, %s1272_s13, %s1273_s29  }
  0x20   : > { %1228 = dma.done.wait (%p1384_p12), [#allocation3], 12288  }
  0x21   : > { %1230 = vsyncadd (%p1384_p12), [#allocation3], 4294955008 }
  0x22   : > { %1232 = dma.done.wait (%p1384_p12), [#allocation6], 4096  }
  0x23   : > { %1234 = vsyncadd (%p1384_p12), [#allocation6], 4294963200  ;;  %s979_s26 = sshll.u32 %s1253_s24, 1  ;;  %p346_p1 = scmp.lt.s32.totalorder %s1257_s25, 1  ;;  %vm378_vm0 = vcmask 64512   ;;  %v374_v0 = vld [vmem:[%s1511_s2] sm:$0xff] }
  0x24   : > { %p348_p2 = scmp.lt.s32.totalorder %s979_s26, 3  ;;  %s982_s27 = sadd.s32 4294967295, %s1253_s24  ;;  %v492_v1 = vld [vmem:[#allocation2 + $0xf0] sm:$0xff]  ;;  %400 = vmatpush.msra.mxu0 %v374_v0  ;;  %428 = vmatpush.msra.mxu1 %v374_v0  ;;  %v490_v3 = vld [vmem:[#allocation2 + $0xe0] sm:$0xff]  ;;  %v493_v9 = vld [vmem:[#allocation2 + $0xf8] sm:$0xff]  ;;  %vm439_vm1 = vcmask 1043456  }
  0x25   : > { %s1415_s7 = scalar_select %p346_p1, %s1257_s25, 1  ;;  %560 = vmatpush.msra.mxu2 %v492_v1  ;;  %v524_v4 = vld [vmem:[#allocation2 + $0x1f0] sm:$0xff]  ;;  %v522_v5 = vld [vmem:[#allocation2 + $0x1e0] sm:$0xff]  ;;  %v491_v11 = vld [vmem:[#allocation2 + $0xe8] sm:$0xff]  ;;  %vm447_vm2 = vcmask 1045504  }
  0x26   : > { %s1542_s26 = smov (!%p348_p2, %s979_s26), 3  ;;  %p356_p4 = scmp.gt.s32.totalorder %s982_s27, 0  ;;  %v488_v6 = vld [vmem:[#allocation2 + $0xd0] sm:$0xff]  ;;  %583 = vmatpush.msra.mxu3 %v524_v4  ;;  %v486_v8 = vld [vmem:[#allocation2 + $0xc0] sm:$0xff]  ;;  %629 = vmatpush.msrb.mxu1 %v493_v9  ;;  %v489_v16 = vld [vmem:[#allocation2 + $0xd8] sm:$0xff] }
  0x27   : > { %s980_s8 = sshll.u32 %s1415_s7, 2  ;;  %561 = vmatpush.msra.mxu2 %v490_v3  ;;  %v520_v7 = vld [vmem:[#allocation2 + $0x1d0] sm:$0xff]  ;;  %v518_v10 = vld [vmem:[#allocation2 + $0x1c0] sm:$0xff]  ;;  %v487_v20 = vld [vmem:[#allocation2 + $0xc8] sm:$0xff]  ;;  %p433_p6 = scmp.gt.s32.totalorder %s1253_s24, 0 }
  0x28   : > { %s351_s9 = sadd.s32 %s980_s8, %s1542_s26  ;;  %s1544_s27 = smov (!%p356_p4, %s982_s27), 0  ;;  %584 = vmatpush.msra.mxu3 %v522_v5  ;;  %v484_v13 = vld [vmem:[#allocation2 + $0xb0] sm:$0xff]  ;;  %630 = vmatpush.msrb.mxu1 %v491_v11  ;;  %v482_v17 = vld [vmem:[#allocation2 + $0xa0] sm:$0xff]  ;;  %v485_v27 = vld [vmem:[#allocation2 + $0xb8] sm:$0xff] }
  0x29   : > { %s981_s15 = sshll.u32 %s351_s9, 3  ;;  %s983_s10 = sshll.u32 %s1544_s27, 1  ;;  %562 = vmatpush.msra.mxu2 %v488_v6  ;;  %v556_v14 = vld [vmem:[#allocation2 + $0x2f0] sm:$0xff]  ;;  %v554_v18 = vld [vmem:[#allocation2 + $0x2e0] sm:$0xff]  ;;  %v483_v31 = vld [vmem:[#allocation2 + $0xa8] sm:$0xff] }
  0x2a   : > { %s353_s30 = scalar_lea.vmem %s1509_s0, %s981_s15  ;;  %p361_p5 = scmp.lt.s32.totalorder %s983_s10, 3  ;;  %585 = vmatpush.msra.mxu3 %v520_v7  ;;  %v516_v15 = vld [vmem:[#allocation2 + $0x1b0] sm:$0xff]  ;;  %606 = vmatpush.msrb.mxu0 %v556_v14  ;;  %v514_v19 = vld [vmem:[#allocation2 + $0x1a0] sm:$0xff]  ;;  %v481_v35 = vld [vmem:[#allocation2 + $0x98] sm:$0xff] }
  0x2b   : > { %v375_v2 = vld [vmem:[%s353_s30] sm:$0xff]  ;;  %v376_v12 = vld [vmem:[%s353_s30 + $0x8] sm:$0xff]  ;;  %563 = vmatpush.msra.mxu2 %v486_v8  ;;  %v480_v22 = vld [vmem:[#allocation2 + $0x90] sm:$0xff]  ;;  %631 = vmatpush.msrb.mxu1 %v489_v16  ;;  %s434_s9 = scalar_select %p433_p6, 1.0, 0.0 }
  0x2c   : > { %986 = vmatmul.msk.f32.vlgmr.msra.gmra.mxu0 %vm378_vm0, %v375_v2  ;;  %s1546_s10 = smov (!%p361_p5, %s983_s10), 3  ;;  %586 = vmatpush.msra.mxu3 %v518_v10  ;;  %v512_v24 = vld [vmem:[#allocation2 + $0x190] sm:$0xff]  ;;  %v478_v26 = vld [vmem:[#allocation2 + $0x80] sm:$0xff]  ;;  %v479_v39 = vld [vmem:[#allocation2 + $0x88] sm:$0xff]  ;;  %s342_s17 = sand.u32 1, %s1245_s22  }
  0x2d   : > { %s364_s13 = sadd.s32 %s980_s8, %s1546_s10  ;;  %564 = vmatpush.msra.mxu2 %v484_v13  ;;  %607 = vmatpush.msrb.mxu0 %v554_v18  ;;  %v552_v25 = vld [vmem:[#allocation2 + $0x2d0] sm:$0xff]  ;;  %v510_v28 = vld [vmem:[#allocation2 + $0x180] sm:$0xff]  ;;  %v477_v43 = vld [vmem:[#allocation2 + $0x78] sm:$0xff]  ;;  %s998_s18 = sshll.u32 %s1253_s24, 2 }
  0x2e   : > { %s985_s29 = sshll.u32 %s364_s13, 3  ;;  %587 = vmatpush.msra.mxu3 %v516_v15  ;;  %632 = vmatpush.msrb.mxu1 %v487_v20  ;;  %v550_v29 = vld [vmem:[#allocation2 + $0x2c0] sm:$0xff]  ;;  %v476_v30 = vld [vmem:[#allocation2 + $0x70] sm:$0xff]  ;;  %v525_v52 = vld [vmem:[#allocation2 + $0x1f8] sm:$0xff]  ;;  %s994_s19 = sshll.u32 %s1257_s25, 3 }
  0x2f   : > { %s366_s27 = scalar_lea.vmem %s1510_s1, %s985_s29  ;;  %565 = vmatpush.msra.mxu2 %v482_v17  ;;  %608 = vmatpush.msrb.mxu0 %v552_v25  ;;  %v508_v32 = vld [vmem:[#allocation2 + $0x170] sm:$0xff]  ;;  %v474_v34 = vld [vmem:[#allocation2 + $0x60] sm:$0xff]  ;;  %v475_v54 = vld [vmem:[#allocation2 + $0x68] sm:$0xff]  ;;  %s978_s30 = sshll.u32 %s342_s17, 5 }
  0x30   : > { %v408_v21 = vld [vmem:[%s366_s27 + $0x8] sm:$0xff]  ;;  %588 = vmatpush.msra.mxu3 %v514_v19  ;;  %633 = vmatpush.msrb.mxu1 %v485_v27  ;;  %v548_v33 = vld [vmem:[#allocation2 + $0x2b0] sm:$0xff]  ;;  %v506_v36 = vld [vmem:[#allocation2 + $0x160] sm:$0xff]  ;;  %s839_s10 = sadd.s32 %s998_s18, %s994_s19  ;;  %s344_s29 = scalar_lea.vmem [#allocation7], %s978_s30 }
  0x31   : > { %v410_v23 = vrot.slane %v408_v21, 4  ;;  %566 = vmatpush.msra.mxu2 %v480_v22  ;;  %609 = vmatpush.msrb.mxu0 %v550_v29  ;;  %v546_v37 = vld [vmem:[#allocation2 + $0x2a0] sm:$0xff]  ;;  %v472_v38 = vld [vmem:[#allocation2 + $0x50] sm:$0xff]  ;;  %v523_v55 = vld [vmem:[#allocation2 + $0x1e8] sm:$0xff]  ;;  %s995_s13 = sshll.u32 %s839_s10, 3  ;;  %s842_s25 = sshll.u32 %s344_s29, 4  ;;  %s843_s25 = int_to_ptr.vmem [resolvable:$true] %s842_s25 }
  0x32   : > { %589 = vmatpush.msra.mxu3 %v512_v24  ;;  %634 = vmatpush.msrb.mxu1 %v483_v31  ;;  %v504_v40 = vld [vmem:[#allocation2 + $0x150] sm:$0xff]  ;;  %v470_v42 = vld [vmem:[#allocation2 + $0x40] sm:$0xff]  ;;  %v473_v58 = vld [vmem:[#allocation2 + $0x58] sm:$0xff]  ;;  %s841_s24 = scalar_lea.hbm %s1515_s6, %s995_s13  ;;  %s827_s7 = scalar_lea.sflag [#allocation4], %s342_s17 }
  0x33   : > { %988 = vmatmul.msk.f32.vlgmr.msra.gmra.mxu1 %vm378_vm0, %v410_v23  ;;  %567 = vmatpush.msra.mxu2 %v478_v26  ;;  %v544_v41 = vld [vmem:[#allocation2 + $0x290] sm:$0xff]  ;;  %v502_v44 = vld [vmem:[#allocation2 + $0x140] sm:$0xff]  ;;  %v521_v59 = vld [vmem:[#allocation2 + $0x1d8] sm:$0xff]  ;;  %s844_s27 = sshll.u32 %s841_s24, 4  ;;  %s1187_s18 = scalar_lea.hbm %s1515_s6, 128  ;;  %s845_s27 = int_to_ptr.hbm [resolvable:$true] %s844_s27 }
  0x34   : > { %987 = vmatmul.msk.f32.gmra.mxu0 %vm378_vm0, %v376_v12  ;;  %590 = vmatpush.msra.mxu3 %v510_v28  ;;  %v468_v45 = vld [vmem:[#allocation2 + $0x30] sm:$0xff]  ;;  %v466_v47 = vld [vmem:[#allocation2 + $0x20] sm:$0xff]  ;;  %v557_v60 = vld [vmem:[#allocation2 + $0x2f8] sm:$0xff]  ;;  %s1181_s8 = sshra.s32 %s845_s27, 4  ;;  %s1182_s8 = int_to_ptr.hbm [resolvable:$true] %s1181_s8 }
  0x35   : > { %568 = vmatpush.msra.mxu2 %v476_v30  ;;  %610 = vmatpush.msrb.mxu0 %v548_v33  ;;  %v500_v46 = vld [vmem:[#allocation2 + $0x130] sm:$0xff]  ;;  %v498_v48 = vld [vmem:[#allocation2 + $0x120] sm:$0xff]  ;;  %v471_v62 = vld [vmem:[#allocation2 + $0x48] sm:$0xff]  ;;  %p1188_p11 = scmp.lt.s32.totalorder %s1182_s8, %s1515_s6 }
  0x36   : > { %591 = vmatpush.msra.mxu3 %v508_v32  ;;  %635 = vmatpush.msrb.mxu1 %v481_v35  ;;  %v464_v49 = vld [vmem:[#allocation2 + $0x10] sm:$0xff]  ;;  %v462_v51 = vld [vmem:[#allocation2] sm:$0xff]  ;;  %v519_v63 = vld [vmem:[#allocation2 + $0x1c8] sm:$0xff] }
  0x37   : > { %569 = vmatpush.msra.mxu2 %v474_v34  ;;  %611 = vmatpush.msrb.mxu0 %v546_v37  ;;  %v496_v50 = vld [vmem:[#allocation2 + $0x110] sm:$0xff]  ;;  %v542_v53 = vld [vmem:[#allocation2 + $0x280] sm:$0xff]  ;;  %v555_v0 = vld [vmem:[#allocation2 + $0x2e8] sm:$0xff] }
  0x38   : > { %592 = vmatpush.msra.mxu3 %v506_v36  ;;  %636 = vmatpush.msrb.mxu1 %v479_v39  ;;  %v494_v56 = vld [vmem:[#allocation2 + $0x100] sm:$0xff]  ;;  %v540_v57 = vld [vmem:[#allocation2 + $0x270] sm:$0xff]  ;;  %v469_v2 = vld [vmem:[#allocation2 + $0x38] sm:$0xff] }
  0x39   : > { %570 = vmatpush.msra.mxu2 %v472_v38  ;;  %612 = vmatpush.msrb.mxu0 %v544_v41  ;;  %v538_v61 = vld [vmem:[#allocation2 + $0x260] sm:$0xff]  ;;  %v536_v1 = vld [vmem:[#allocation2 + $0x250] sm:$0xff]  ;;  %v517_v3 = vld [vmem:[#allocation2 + $0x1b8] sm:$0xff] }
  0x3a   : > { %593 = vmatpush.msra.mxu3 %v504_v40  ;;  %637 = vmatpush.msrb.mxu1 %v477_v43  ;;  %v553_v4 = vld [vmem:[#allocation2 + $0x2d8] sm:$0xff]  ;;  %v534_v5 = vld [vmem:[#allocation2 + $0x240] sm:$0xff]  ;;  %v467_v6 = vld [vmem:[#allocation2 + $0x28] sm:$0xff] }
  0x3b   : > { %571 = vmatpush.msra.mxu2 %v470_v42  ;;  %613 = vmatpush.msrb.mxu0 %v542_v53  ;;  %v515_v7 = vld [vmem:[#allocation2 + $0x1a8] sm:$0xff]  ;;  %v532_v9 = vld [vmem:[#allocation2 + $0x230] sm:$0xff]  ;;  %v465_v10 = vld [vmem:[#allocation2 + $0x18] sm:$0xff] }
  0x3c   : > { %594 = vmatpush.msra.mxu3 %v502_v44  ;;  %638 = vmatpush.msrb.mxu1 %v475_v54  ;;  %v551_v8 = vld [vmem:[#allocation2 + $0x2c8] sm:$0xff]  ;;  %v513_v11 = vld [vmem:[#allocation2 + $0x198] sm:$0xff]  ;;  %v530_v13 = vld [vmem:[#allocation2 + $0x220] sm:$0xff] }
  0x3d   : > { %572 = vmatpush.msra.mxu2 %v468_v45  ;;  %614 = vmatpush.msrb.mxu0 %v540_v57  ;;  %v549_v12 = vld [vmem:[#allocation2 + $0x2b8] sm:$0xff]  ;;  %v463_v14 = vld [vmem:[#allocation2 + $0x8] sm:$0xff]  ;;  %v528_v17 = vld [vmem:[#allocation2 + $0x210] sm:$0xff] }
  0x3e   : > { %595 = vmatpush.msra.mxu3 %v500_v46  ;;  %639 = vmatpush.msrb.mxu1 %v473_v58  ;;  %v511_v15 = vld [vmem:[#allocation2 + $0x188] sm:$0xff]  ;;  %v509_v18 = vld [vmem:[#allocation2 + $0x178] sm:$0xff]  ;;  %v526_v20 = vld [vmem:[#allocation2 + $0x200] sm:$0xff]  ;;  %v435_v46 = vstv %s434_s9  ;;  %s1183_s9 = scalar_lea.hbm %s1182_s8, 32 }
  0x3f   : > { %573 = vmatpush.msra.mxu2 %v466_v47  ;;  %615 = vmatpush.msrb.mxu0 %v538_v61  ;;  %v547_v16 = vld [vmem:[#allocation2 + $0x2a8] sm:$0xff]  ;;  %v545_v19 = vld [vmem:[#allocation2 + $0x298] sm:$0xff]  ;;  %v1437_v35 = vld [vmem:[%s1514_s5] sm:$0xff]  ;;  %p1184_p7 = scmp.ne.s32.totalorder %s1182_s8, %s1183_s9  ;;  %p1189_p12 = scmp.lt.s32.totalorder %s1187_s18, %s1183_s9 }
  0x40   : > { %596 = vmatpush.msra.mxu3 %v498_v48  ;;  %640 = vmatpush.msrb.mxu1 %v471_v62  ;;  %v507_v21 = vld [vmem:[#allocation2 + $0x168] sm:$0xff]  ;;  %v505_v23 = vld [vmem:[#allocation2 + $0x158] sm:$0xff]  ;;  %v377_v38 = vperm.slane %v1437_v35, 0  ;;  %v770_v61 = vld [vmem:[#allocation5 + $0xf0] sm:$0xff] }
  0x41   : > { %574 = vmatpush.msra.mxu2 %v464_v49  ;;  %616 = vmatpush.msrb.mxu0 %v536_v1  ;;  %v543_v22 = vld [vmem:[#allocation2 + $0x288] sm:$0xff]  ;;  %v541_v24 = vld [vmem:[#allocation2 + $0x278] sm:$0xff]  ;;  %v766_v1 = vld [vmem:[#allocation5 + $0xd0] sm:$0xff]  ;;  %p1185_p9 = pnand %p1184_p7, %p1364_p3  ;;  %p1190_p13 = por %p1189_p12, %p1188_p11 }
  0x42   : > { %597 = vmatpush.msra.mxu3 %v496_v50  ;;  %641 = vmatpush.msrb.mxu1 %v469_v2  ;;  %v503_v25 = vld [vmem:[#allocation2 + $0x148] sm:$0xff]  ;;  %v501_v27 = vld [vmem:[#allocation2 + $0x138] sm:$0xff] }
  0x43   : > { %575 = vmatpush.msra.mxu2 %v462_v51  ;;  %617 = vmatpush.msrb.mxu0 %v534_v5  ;;  %v539_v26 = vld [vmem:[#allocation2 + $0x268] sm:$0xff]  ;;  %v537_v28 = vld [vmem:[#allocation2 + $0x258] sm:$0xff]  ;;  %v762_v5 = vld [vmem:[#allocation5 + $0xb0] sm:$0xff]  ;;  %p1186_p10 = pneg %p1185_p9 }
  0x44   : > { %598 = vmatpush.msra.mxu3 %v494_v56  ;;  %642 = vmatpush.msrb.mxu1 %v467_v6  ;;  %v499_v29 = vld [vmem:[#allocation2 + $0x128] sm:$0xff]  ;;  %v497_v31 = vld [vmem:[#allocation2 + $0x118] sm:$0xff] }
  0x45   : > { %652 = vmatpush.msrb.mxu2 %v525_v52  ;;  %618 = vmatpush.msrb.mxu0 %v532_v9  ;;  %v535_v30 = vld [vmem:[#allocation2 + $0x248] sm:$0xff]  ;;  %v533_v32 = vld [vmem:[#allocation2 + $0x238] sm:$0xff]  ;;  %p1191_p0 = pnand %p1190_p13, %p1186_p10 }
  0x46   : > { %675 = vmatpush.msrb.mxu3 %v557_v60  ;;  %643 = vmatpush.msrb.mxu1 %v465_v10  ;;  %v495_v33 = vld [vmem:[#allocation2 + $0x108] sm:$0xff]  ;;  %v529_v37 = vld [vmem:[#allocation2 + $0x218] sm:$0xff]  ;;  %v758_v10 = vld [vmem:[#allocation5 + $0x90] sm:$0xff] }
  0x47   : > { %653 = vmatpush.msrb.mxu2 %v523_v55  ;;  %619 = vmatpush.msrb.mxu0 %v530_v13  ;;  %v531_v34 = vld [vmem:[#allocation2 + $0x228] sm:$0xff]  ;;  %v771_v62 = vld [vmem:[#allocation5 + $0xf8] sm:$0xff]  ;;  %v756_v13 = vld [vmem:[#allocation5 + $0x80] sm:$0xff] }
  0x48   : > { %676 = vmatpush.msrb.mxu3 %v555_v0  ;;  %644 = vmatpush.msrb.mxu1 %v463_v14  ;;  %v527_v39 = vld [vmem:[#allocation2 + $0x208] sm:$0xff]  ;;  %v767_v2 = vld [vmem:[#allocation5 + $0xd8] sm:$0xff] }
  0x49   : > { %654 = vmatpush.msrb.mxu2 %v521_v59  ;;  %620 = vmatpush.msrb.mxu0 %v528_v17  ;;  %v769_v0 = vld [vmem:[#allocation5 + $0xe8] sm:$0xff]  ;;  %v763_v6 = vld [vmem:[#allocation5 + $0xb8] sm:$0xff]  ;;  %v752_v17 = vld [vmem:[#allocation5 + $0x60] sm:$0xff] }
  0x4a   : > { %677 = vmatpush.msrb.mxu3 %v553_v4  ;;  %797 = vmatpush.msra.mxu1 %v771_v62  ;;  %v765_v4 = vld [vmem:[#allocation5 + $0xc8] sm:$0xff] }
  0x4b   : > { %655 = vmatpush.msrb.mxu2 %v519_v63  ;;  %621 = vmatpush.msrb.mxu0 %v526_v20  ;;  %v768_v63 = vld [vmem:[#allocation5 + $0xe0] sm:$0xff]  ;;  %v757_v14 = vld [vmem:[#allocation5 + $0x88] sm:$0xff] }
  0x4c   : > { %678 = vmatpush.msrb.mxu3 %v551_v8  ;;  %798 = vmatpush.msra.mxu1 %v769_v0  ;;  %v761_v8 = vld [vmem:[#allocation5 + $0xa8] sm:$0xff] }
  0x4d   : > { %656 = vmatpush.msrb.mxu2 %v517_v3  ;;  %774 = vmatpush.msra.mxu0 %v770_v61  ;;  %v764_v3 = vld [vmem:[#allocation5 + $0xc0] sm:$0xff]  ;;  %v1456_v20 = vld [vmem:[%s1514_s5 + $0x8] sm:$0xff] }
  0x4e   : > { %679 = vmatpush.msrb.mxu3 %v549_v12  ;;  %799 = vmatpush.msra.mxu1 %v767_v2 }
  0x4f   : > { %657 = vmatpush.msrb.mxu2 %v515_v7  ;;  %775 = vmatpush.msra.mxu0 %v768_v63  ;;  %v760_v7 = vld [vmem:[#allocation5 + $0xa0] sm:$0xff] }
  0x50   : > { %680 = vmatpush.msrb.mxu3 %v547_v16  ;;  %800 = vmatpush.msra.mxu1 %v765_v4  ;;  %v755_v16 = vld [vmem:[#allocation5 + $0x78] sm:$0xff] }
  0x51   : > { %658 = vmatpush.msrb.mxu2 %v513_v11  ;;  %776 = vmatpush.msra.mxu0 %v766_v1  ;;  %v759_v11 = vld [vmem:[#allocation5 + $0x98] sm:$0xff] }
  0x52   : > { %681 = vmatpush.msrb.mxu3 %v545_v19  ;;  %801 = vmatpush.msra.mxu1 %v763_v6 }
  0x53   : > { %659 = vmatpush.msrb.mxu2 %v511_v15  ;;  %777 = vmatpush.msra.mxu0 %v764_v3  ;;  %v754_v15 = vld [vmem:[#allocation5 + $0x70] sm:$0xff] }
  0x54   : > { %682 = vmatpush.msrb.mxu3 %v543_v22  ;;  %802 = vmatpush.msra.mxu1 %v761_v8  ;;  %v751_v22 = vld [vmem:[#allocation5 + $0x58] sm:$0xff] }
  0x55   : > { %660 = vmatpush.msrb.mxu2 %v509_v18  ;;  %778 = vmatpush.msra.mxu0 %v762_v5  ;;  %v753_v18 = vld [vmem:[#allocation5 + $0x68] sm:$0xff] }
  0x56   : > { %683 = vmatpush.msrb.mxu3 %v541_v24  ;;  %803 = vmatpush.msra.mxu1 %v759_v11  ;;  %v749_v24 = vld [vmem:[#allocation5 + $0x48] sm:$0xff] }
  0x57   : > { %661 = vmatpush.msrb.mxu2 %v507_v21  ;;  %779 = vmatpush.msra.mxu0 %v760_v7  ;;  %v750_v21 = vld [vmem:[#allocation5 + $0x50] sm:$0xff] }
  0x58   : > { %684 = vmatpush.msrb.mxu3 %v539_v26  ;;  %804 = vmatpush.msra.mxu1 %v757_v14 }
  0x59   : > { %662 = vmatpush.msrb.mxu2 %v505_v23  ;;  %780 = vmatpush.msra.mxu0 %v758_v10  ;;  %v748_v23 = vld [vmem:[#allocation5 + $0x40] sm:$0xff] }
  0x5a   : > { %685 = vmatpush.msrb.mxu3 %v537_v28  ;;  %805 = vmatpush.msra.mxu1 %v755_v16  ;;  %v747_v28 = vld [vmem:[#allocation5 + $0x38] sm:$0xff] }
  0x5b   : > { %663 = vmatpush.msrb.mxu2 %v503_v25  ;;  %781 = vmatpush.msra.mxu0 %v756_v13 }
  0x5c   : > { %686 = vmatpush.msrb.mxu3 %v535_v30  ;;  %806 = vmatpush.msra.mxu1 %v753_v18  ;;  %v744_v30 = vld [vmem:[#allocation5 + $0x20] sm:$0xff] }
  0x5d   : > { %664 = vmatpush.msrb.mxu2 %v501_v27  ;;  %782 = vmatpush.msra.mxu0 %v754_v15  ;;  %v746_v27 = vld [vmem:[#allocation5 + $0x30] sm:$0xff] }
  0x5e   : > { %687 = vmatpush.msrb.mxu3 %v533_v32  ;;  %807 = vmatpush.msra.mxu1 %v751_v22  ;;  %v742_v32 = vld [vmem:[#allocation5 + $0x10] sm:$0xff] }
  0x5f   : > { %665 = vmatpush.msrb.mxu2 %v499_v29  ;;  %783 = vmatpush.msra.mxu0 %v752_v17  ;;  %v559_v29 = vperm.slane %v1456_v20, 1 }
  0x60   : > { %688 = vmatpush.msrb.mxu3 %v531_v34  ;;  %808 = vmatpush.msra.mxu1 %v749_v24 }
  0x61   : > { %666 = vmatpush.msrb.mxu2 %v497_v31  ;;  %784 = vmatpush.msra.mxu0 %v750_v21  ;;  %v745_v31 = vld [vmem:[#allocation5 + $0x28] sm:$0xff] }
  0x62   : > { %689 = vmatpush.msrb.mxu3 %v529_v37  ;;  %809 = vmatpush.msra.mxu1 %v747_v28  ;;  %v740_v37 = vld [vmem:[#allocation5] sm:$0xff] }
  0x63   : > { %667 = vmatpush.msrb.mxu2 %v495_v33  ;;  %785 = vmatpush.msra.mxu0 %v748_v23  ;;  %v743_v33 = vld [vmem:[#allocation5 + $0x18] sm:$0xff] }
  0x64   : > { %690 = vmatpush.msrb.mxu3 %v527_v39  ;;  %810 = vmatpush.msra.mxu1 %v745_v31 }
  0x65   : > { %786 = vmatpush.msra.mxu0 %v746_v27  ;;  %v773_v27 = vperm.slane %v1456_v20, 2 }
  0x66   : > { %811 = vmatpush.msra.mxu1 %v743_v33 }
  0x67   : > { %787 = vmatpush.msra.mxu0 %v744_v30 }
  0x69   : > { %788 = vmatpush.msra.mxu0 %v742_v32 }
  0x6b   : > { %789 = vmatpush.msra.mxu0 %v740_v37 }
  0xa9   : > { %v402_v36 = vpop.f32.mrf.mxu0 }
  0xaa   : > { %v1441_v40 = vadd.f32 %v402_v36, %v377_v38 }
  0xac   : > { %v440_v43 = vrot.slane %v1441_v40, 4 }
  0xb0   : > { %v430_v45 = vpop.f32.mrf.mxu1 }
  0xb1   : > { %v405_v41 = vpop.f32.mrf.mxu0  ;;  %v431_v47 = vadd.f32 %v430_v45, %v377_v38 }
  0xb2   : > { %v1443_v42 = vadd.f32 %v405_v41, %v377_v38  ;;  %v741_v38 = vld [vmem:[#allocation5 + $0x8] sm:$0xff] }
  0xb3   : > { %v436_v49 = vmul.f32 %v435_v46, %v431_v47  ;;  %812 = vmatpush.msra.mxu1 %v741_v38 }
  0xb4   : > { %v441_v44 = vrot.slane %v1443_v42, 4 }
  0xb5   : > { %v445_v52 = vsel %vm439_vm1, %v436_v49, %v440_v43 }
  0xb6   : > { %v442_v48 = vsel %vm439_vm1, %v440_v43, %v441_v44  ;;  %576 = vmatmul.f32.vlgmr.msra.gmra.mxu2 %v445_v52  ;;  %645 = vmatmul.f32.vlgmr.msrb.gmra.mxu1 %v445_v52  ;;  %v448_v53 = vrot.slane %v445_v52, 2  ;;  %v455_v54 = vrot.slane %v445_v52, 4  ;;  %v451_v57 = vrot.slane %v441_v44, 2 }
  0xb7   : > { %v449_v50 = vrot.slane %v442_v48, 2  ;;  %v456_v51 = vrot.slane %v442_v48, 4  ;;  %v458_v58 = vrot.slane %v441_v44, 4 }
  0xb9   : > { %v450_v55 = vsel %vm447_vm2, %v448_v53, %v449_v50  ;;  %v457_v56 = vsel %vm439_vm1, %v455_v54, %v456_v51  ;;  %v452_v59 = vsel %vm447_vm2, %v449_v50, %v451_v57  ;;  %v459_v60 = vsel %vm439_vm1, %v456_v51, %v458_v58 }
  0xba   : > { %599 = vmatmul.f32.vlgmr.msra.gmra.mxu3 %v450_v55  ;;  %622 = vmatmul.f32.vlgmr.msrb.gmra.mxu0 %v457_v56  ;;  %v558_v51 = vperm.slane %v1437_v35, 1 }
  0xbe   : > { %579 = vmatmul.f32.gmra.mxu2 %v442_v48  ;;  %648 = vmatmul.f32.gmra.mxu1 %v442_v48 }
  0xc2   : > { %602 = vmatmul.f32.gmra.mxu3 %v452_v59  ;;  %625 = vmatmul.f32.gmra.mxu0 %v459_v60 }
  0xc6   : > { %668 = vmatmul.f32.vlgmr.msrb.gmra.mxu2 %v450_v55 }
  0xca   : > { %691 = vmatmul.f32.vlgmr.msrb.gmra.mxu3 %v457_v56 }
  0xce   : > { %671 = vmatmul.f32.gmra.mxu2 %v452_v59 }
  0xd2   : > { %694 = vmatmul.f32.gmra.mxu3 %v459_v60 }
 0x133   : > { %v646_v25 = vpop.f32.mrf.mxu1 }
 0x134   : > { %v647_v34 = vadd.f32 %v646_v25, %v559_v29 }
 0x137   : > { %v623_v57 = vpop.f32.mrf.mxu0 }
 0x139   : > { %v1451_v9 = vpop.f32.mrf.mxu2 }
 0x13a   : > { %v578_v55 = vadd.f32 %v1451_v9, %v558_v51 }
 0x13b   : > { %v649_v44 = vpop.f32.mrf.mxu1 }
 0x13c   : > { %v650_v46 = vadd.f32 %v649_v44, %v559_v29 }
 0x13d   : > { %v600_v12 = vpop.f32.mrf.mxu3 }
 0x13e   : > { %v601_v56 = vadd.f32 %v600_v12, %v578_v55 }
 0x13f   : > { %v626_v5 = vpop.f32.mrf.mxu0 }
 0x140   : > { %v624_v60 = vadd.f32 %v623_v57, %v601_v56 }
 0x141   : > { %v580_v19 = vpop.f32.mrf.mxu2 }
 0x142   : > { %v581_v63 = vadd.f32 %v580_v19, %v558_v51 }
 0x145   : > { %v603_v26 = vpop.f32.mrf.mxu3 }
 0x146   : > { %v604_v1 = vadd.f32 %v603_v26, %v581_v63  ;;  %v772_v26 = vperm.slane %v1437_v35, 2 }
 0x148   : > { %v627_v8 = vadd.f32 %v626_v5, %v604_v1 }
 0x149   : > { %v669_v36 = vpop.f32.mrf.mxu2 }
 0x14a   : > { %v670_v39 = vadd.f32 %v669_v36, %v647_v34 }
 0x14d   : > { %v692_v41 = vpop.f32.mrf.mxu3 }
 0x14e   : > { %v693_v43 = vadd.f32 %v692_v41, %v670_v39 }
 0x150   : > { %v989_v45 = vmul.f32 -1.442695, %v693_v43 }
 0x151   : > { %v672_v47 = vpop.f32.mrf.mxu2 }
 0x152   : > { %1095 = vpow2.f32 %v989_v45  ;;  %v673_v48 = vadd.f32 %v672_v47, %v650_v46 }
 0x155   : > { %v695_v49 = vpop.f32.mrf.mxu3 }
 0x156   : > { %v696_v50 = vadd.f32 %v695_v49, %v673_v48 }
 0x158   : > { %v1096_v52 = vpop.eup %1095  ;;  %v990_v53 = vmul.f32 -1.442695, %v696_v50 }
 0x159   : > { %v706_v54 = vadd.f32 1.0, %v1096_v52 }
 0x15a   : > { %1097 = vpow2.f32 %v990_v53 }
 0x15b   : > { %1099 = vrcp.f32 %v706_v54  ;;  %v719_v2 = vand.u32 2147483648, %v706_v54  ;;  %v717_v4 = vand.u32 2147483647, %v706_v54  ;;  %vm713_vm4 = vweird.f32 %v706_v54 }
 0x15d   : > { %v720_v9 = vor.u32 1.1754944e-38, %v719_v2  ;;  %vm718_vm6 = vcmp.eq.f32.partialorder %v717_v4, 8.507059e+37 }
 0x160   : > { %v1098_v58 = vpop.eup %1097 }
 0x161   : > { %v1100_v59 = vpop.eup %1099  ;;  %v707_v61 = vadd.f32 1.0, %v1098_v58 }
 0x162   : > { %v709_v62 = vmul.f32 %v1100_v59, %v706_v54  ;;  %vm714_vm3 = vweird.f32 %v1100_v59 }
 0x163   : > { %1101 = vrcp.f32 %v707_v61  ;;  %vm715_vm5 = vmor %vm713_vm4, %vm714_vm3  ;;  %v734_v16 = vand.u32 2147483648, %v707_v61  ;;  %v732_v18 = vand.u32 2147483647, %v707_v61  ;;  %vm728_vm8 = vweird.f32 %v707_v61 }
 0x164   : > { %v710_v0 = vsub.f32 1.0, %v709_v62  ;;  %1103 = vtanh.f32 %v624_v60 }
 0x165   : > { %1105 = vtanh.f32 %v627_v8  ;;  %v735_v21 = vor.u32 1.1754944e-38, %v734_v16  ;;  %vm733_vm10 = vcmp.eq.f32.partialorder %v732_v18, 8.507059e+37 }
 0x166   : > { %v711_v3 = vmul.f32 %v1100_v59, %v710_v0 }
 0x168   : > { %v712_v6 = vadd.f32 %v1100_v59, %v711_v3 }
 0x169   : > { %v1102_v7 = vpop.eup %1101 }
 0x16a   : > { %v716_v10 = vsel %vm715_vm5, %v1100_v59, %v712_v6  ;;  %v724_v11 = vmul.f32 %v1102_v7, %v707_v61  ;;  %v1104_v12 = vpop.eup %1103  ;;  %vm729_vm7 = vweird.f32 %v1102_v7 }
 0x16b   : > { %v721_v13 = vsel %vm718_vm6, %v720_v9, %v716_v10  ;;  %vm730_vm9 = vmor %vm728_vm8, %vm729_vm7  ;;  %v1106_v23 = vpop.eup %1105 }
 0x16c   : > { %v738_v14 = vmul.f32 %v1104_v12, %v721_v13  ;;  %v725_v15 = vsub.f32 1.0, %v724_v11 }
 0x16e   : > { %790 = vmatmul.f32.vlgmr.msra.gmra.mxu0 %v738_v14  ;;  %813 = vmatmul.f32.vlgmr.msra.gmra.mxu1 %v738_v14  ;;  %v726_v17 = vmul.f32 %v1102_v7, %v725_v15 }
 0x170   : > { %v727_v19 = vadd.f32 %v1102_v7, %v726_v17 }
 0x172   : > { %v731_v22 = vsel %vm730_vm9, %v1102_v7, %v727_v19 }
 0x173   : > { %v736_v24 = vsel %vm733_vm10, %v735_v21, %v731_v22 }
 0x174   : > { %v739_v25 = vmul.f32 %v1106_v23, %v736_v24 }
 0x176   : > { %793 = vmatmul.f32.gmra.mxu0 %v739_v25  ;;  %816 = vmatmul.f32.gmra.mxu1 %v739_v25 }
 0x1eb   : > { %v791_v28 = vpop.f32.mrf.mxu0  ;;  %v814_v29 = vpop.f32.mrf.mxu1 }
 0x1ec   : > { %v792_v30 = vadd.f32 %v791_v28, %v772_v26  ;;  %v815_v31 = vadd.f32 %v814_v29, %v773_v27 }
 0x1ee   : > { %v820_v32 = vadd.f32 %v792_v30, %v1441_v40  ;;  %823 = vst [vmem:[%s344_s29 + $0x8] sm:$0xff] %v815_v31 }
 0x1f0   : > { %822 = vst [vmem:[%s344_s29] sm:$0xff] %v820_v32 }
 0x1f3   : > { %v794_v35 = vpop.f32.mrf.mxu0  ;;  %v817_v33 = vpop.f32.mrf.mxu1 }
 0x1f4   : > { %v795_v20 = vadd.f32 %v794_v35, %v772_v26  ;;  %v818_v34 = vadd.f32 %v817_v33, %v773_v27 }
 0x1f6   : > { %v821_v36 = vadd.f32 %v795_v20, %v1443_v42  ;;  %825 = vst [vmem:[%s344_s29 + $0x18] sm:$0xff] %v818_v34 }
 0x1f8   : > { %824 = vst [vmem:[%s344_s29 + $0x10] sm:$0xff] %v821_v36 }
 0x1f9   : > { %1194 = shalt.err (!%p1191_p0)
}
 0x1fa   : > { %s1275_s17 = smov 256   ;;  %s1276_s10 = smov 16  }
 0x1fb   : > { %1007 = dma.vmem_to_hbm [thread:$0]  (%p1364_p3), %s843_s25, 512, %s845_s27, %s827_s7, %s1275_s17, %s1275_s17, %s1276_s10  }
 0x1fc PF: > { %p1024_p1 = scmp.ge.s32.totalorder %s1269_s28, 2  ;;  %s859_s13 = sand.u32 1, %s1241_s21  }
 0x1fd   : > { %s860_s29 = scalar_lea.sflag [#allocation4], %s859_s13 }
 0x1fe   : > { %p1017_p2 = pnand %p1024_p1, %p1373_p8 }
 0x200   : > { %p1018_p4 = pneg %p1017_p2 }
 0x202   : > { %1236 = dma.done.wait (%p1018_p4), %s860_s29, 512  }
 0x203   : > { %1238 = vsyncadd (%p1018_p4), %s860_s29, 4294966784  ;;  %s21_s28 = sadd.s32 1, %s1269_s28   ;;  %s1528_s24 = sld [smem:[#allocation11_spill]] }
 0x204   : > { %p18_p5 = scmp.ge.s32.totalorder %s21_s28, 6   ;;  %s1529_s25 = sld [smem:[#allocation12_spill]] }
 0x205   : > { %s1530_s26 = sld [smem:[#allocation13_spill]]  ;;  %s1532_s21 = smov %s1245_s22 }
 0x206   : > { %s1531_s27 = sld [smem:[#allocation14_spill]]  ;;  %s1533_s22 = smov %s1249_s23 }
 0x207   : > { %s1534_s23 = smov %s1394_s20  ;;  %20 = sbr.rel (!%p18_p5) target bundleno = 7 (0x7), region = 91 }
 0x20c   :  { %866 = vsyncpa [#allocation3], 1 }
 0x20d   :  { %868 = vsyncpa [#allocation3 + $0x1], 1 }
 0x20e   :  { %869 = vsyncpa [#allocation6], 1 }
 0x20f   :  { %870 = vsyncpa [#allocation4], 1 }
 0x210   :  { %872 = vsyncpa [#allocation4 + $0x1], 1 }

</bundles_post_ra>
